<compile_context>
chip_gen: v7x
topology: tpu7x:2x2x1
jax: 0.10.0
libtpu: 0.0.40
codegen_flags: <defaults>
</compile_context>

<pallas_src>
import math

import jax
import jax.numpy as jnp
from jax import lax
from jax.experimental import pallas as pl
from jax.experimental.pallas import tpu as pltpu


def _make_pe_kernel(rows_per_vrow: int):
    """Kernel filling its (tile, W) output block with sin(pos*div + bias)."""
    rpv = float(rows_per_vrow)

    def pe_kernel(div_ref, bias_ref, out_ref):
        T, _ = out_ref.shape
        # Global buffer-row offset of this tile (row axis is the only grid dim).
        row0 = pl.program_id(0) * T
        # Position of the first element in each buffer row, as a (T, 1) slab.
        pos = (row0 + lax.broadcasted_iota(jnp.int32, (T, 1), 0)).astype(
            jnp.float32) * rpv
        # Single broadcasted expansion + one transcendental per element.
        out_ref[...] = jnp.sin(pos * div_ref[...] + bias_ref[...])

    return pe_kernel


def build_positional_encoding(dim_model: int, max_len: int,
                              row_tile: int = 512,
                              vmem_target_bytes: int = 8 * 1024 * 1024):
    """Computes the (max_len, dim_model) PE table with a row-tiled Pallas kernel."""
    neg_log = -math.log(10000.0) / float(dim_model)

    # Lane layout: pack several positions per 128-lane row when possible,
    # otherwise pad the feature dim up to a multiple of 128.
    if dim_model <= 128 and 128 % dim_model == 0:
        rows_per_vrow = 128 // dim_model
        W = 128
    else:
        rows_per_vrow = 1
        W = pl.cdiv(dim_model, 128) * 128

    # ---- Grid-invariant per-lane tables (computed once, passed as inputs). ----
    col = jnp.arange(W, dtype=jnp.int32)
    if rows_per_vrow > 1:
        feat = col % dim_model
        pos_off = (col // dim_model).astype(jnp.float32)
    else:
        feat = col
        pos_off = jnp.zeros((W,), jnp.float32)
    in_range = feat < dim_model                       # padding lanes -> 0
    pair2 = (feat & ~1).astype(jnp.float32)           # 2k: 0,0,2,2,4,4,...
    div_col = jnp.where(in_range, jnp.exp(pair2 * neg_log), 0.0).astype(jnp.float32)
    # cos(x) = sin(x + pi/2): odd features carry a pi/2 phase.
    phase = jnp.where((feat & 1) == 1, math.pi / 2.0, 0.0)
    bias_col = (pos_off * div_col
                + jnp.where(in_range, phase, 0.0)).astype(jnp.float32)
    div_col = div_col.reshape(1, W)
    bias_col = bias_col.reshape(1, W)

    # ---- Row tiling (VMEM-aware, >=2 grid steps when possible for v7x). ----
    rows_needed = pl.cdiv(max_len, rows_per_vrow)     # buffer rows
    if rows_needed <= 8:
        tile = rows_needed
        rows_total = rows_needed
    else:
        rows8 = pl.cdiv(rows_needed, 8) * 8
        # Double-buffered output uses 2 * tile * W * 4 bytes of VMEM.
        tile_cap = max(8, (vmem_target_bytes // (2 * W * 4)) // 8 * 8)
        tile = min(row_tile, rows8, tile_cap)
        # Give the "parallel" axis at least 2 steps so v7x's second TC has work.
        half = max(8, pl.cdiv(pl.cdiv(rows8, 2), 8) * 8)
        tile = min(tile, half)
        rows_total = pl.cdiv(rows8, tile) * tile
    grid = (rows_total // tile,)

    pe_buf = pl.pallas_call(
        _make_pe_kernel(rows_per_vrow),
        out_shape=jax.ShapeDtypeStruct((rows_total, W), jnp.float32),
        grid=grid,
        in_specs=[pl.BlockSpec((1, W), lambda i: (0, 0)),
                  pl.BlockSpec((1, W), lambda i: (0, 0))],
        out_specs=pl.BlockSpec((tile, W), lambda i: (i, 0)),
        compiler_params=pltpu.CompilerParams(
            dimension_semantics=("parallel",)),
    )(div_col, bias_col)

    # ---- Unpack / strip padding (skipped entirely when there is none). ----
    if rows_per_vrow > 1:
        pe = pe_buf.reshape(rows_total * rows_per_vrow, dim_model)  # contiguous
        if rows_total * rows_per_vrow != max_len:
            pe = pe[:max_len]
    else:
        if rows_total != max_len or W != dim_model:
            pe = pe_buf[:max_len, :dim_model]
        else:
            pe = pe_buf
    return pe


class PoisionEncoding:
    """JAX equivalent of the PyTorch `poision_encoding` module."""

    def __init__(self, dim_model: int, max_len: int):
        self.dim_model = dim_model
        self.max_len = max_len
        # Buffer (like register_buffer), pre-shaped (max_len, 1, dim_model) so
        # forward is a single slice with no per-call expand_dims copy.
        pe = build_positional_encoding(dim_model, max_len)
        self.pe = pe[:, None, :]

    def __call__(self, x: jnp.ndarray) -> jnp.ndarray:
        l = x.shape[0]
        # pe[:l, :].unsqueeze(1) -> (l, 1, dim_model)
        return lax.slice(self.pe, (0, 0, 0), (l, 1, self.dim_model))


def _reference_pe(dim_model: int, max_len: int) -> jnp.ndarray:
    """Pure-JAX reference mirroring the PyTorch __init__."""
    pos = jnp.arange(max_len, dtype=jnp.float32)[:, None]
    div_term = jnp.exp(
        jnp.arange(0, dim_model, 2, dtype=jnp.float32)
        * (-math.log(10000.0) / dim_model)
    )
    pe = jnp.zeros((max_len, dim_model), dtype=jnp.float32)
    pe = pe.at[:, 0::2].set(jnp.sin(pos * div_term))
    pe = pe.at[:, 1::2].set(jnp.cos(pos * div_term))
    return pe


if __name__ == "__main__":
    dim_model = 32
    max_len = 8

    key = jax.random.PRNGKey(0)
    # Input only matters through its leading dim l; shape (seq=8, batch=2, dim_model).
    x = jax.random.normal(key, (8, 2, dim_model), dtype=jnp.float32)

    module = PoisionEncoding(dim_model, max_len)
    out = jax.block_until_ready(module(x))

    assert out.shape == (x.shape[0], 1, dim_model), out.shape
    ref = _reference_pe(dim_model, max_len)[: x.shape[0]][:, None, :]
    assert jnp.allclose(out, ref, atol=1e-4, rtol=1e-4), "mismatch vs reference"

    # Extra coverage: packed path with row padding (64 lanes, 200 rows) and
    # lane-padded path (192 features -> 256 lanes, 40 rows), multi-step grids.
    for d, L in ((64, 200), (192, 40)):
        pe = jax.block_until_ready(build_positional_encoding(d, L))
        assert pe.shape == (L, d), pe.shape
        ref2 = _reference_pe(d, L)
        assert jnp.allclose(pe, ref2, atol=2e-3, rtol=1e-3), (d, L)

    print("KERNEL_OK")
</pallas_src>

<mosaic_0001>
module attributes {stable_mosaic.version = 11 : i64} {
  func.func @pe_kernel(%arg0: i32, %arg1: memref<1x128xf32, #tpu.memory_space<vmem>>, %arg2: memref<1x128xf32, #tpu.memory_space<vmem>>, %arg3: memref<2x128xf32, #tpu.memory_space<vmem>>) attributes {dimension_semantics = [#tpu.dimension_semantics<parallel>], iteration_bounds = array<i64: 1>, scalar_prefetch = 0 : i64, scratch_operands = 0 : i64, tpu.core_type = #tpu.core_type<tc>, window_params = [{pipeline_mode = #tpu.pipeline_mode<synchronous>, transform_indices = @transform_0, window_bounds = array<i64: 1, 128>}, {pipeline_mode = #tpu.pipeline_mode<synchronous>, transform_indices = @transform_1, window_bounds = array<i64: 1, 128>}, {transform_indices = @transform_2, window_bounds = array<i64: 2, 128>}]} {
    %c2_i32 = arith.constant 2 : i32
    %0 = arith.muli %arg0, %c2_i32 : i32
    %1 = tpu.iota {dimensions = array<i32: 0>} : vector<2x1xi32>
    %2 = vector.broadcast %0 : i32 to vector<2x1xi32>
    %3 = arith.addi %2, %1 : vector<2x1xi32>
    %4 = arith.sitofp %3 : vector<2x1xi32> to vector<2x1xf32>
    %cst = arith.constant 4.000000e+00 : f32
    %5 = vector.broadcast %cst : f32 to vector<2x1xf32>
    %6 = arith.mulf %4, %5 : vector<2x1xf32>
    %c0 = arith.constant 0 : index
    %c0_0 = arith.constant 0 : index
    %7 = vector.load %arg1[%c0, %c0_0] : memref<1x128xf32, #tpu.memory_space<vmem>>, vector<1x128xf32>
    %8 = vector.broadcast %6 : vector<2x1xf32> to vector<2x128xf32>
    %9 = vector.broadcast %7 : vector<1x128xf32> to vector<2x128xf32>
    %10 = arith.mulf %8, %9 : vector<2x128xf32>
    %c0_1 = arith.constant 0 : index
    %c0_2 = arith.constant 0 : index
    %11 = vector.load %arg2[%c0_1, %c0_2] : memref<1x128xf32, #tpu.memory_space<vmem>>, vector<1x128xf32>
    %12 = vector.broadcast %11 : vector<1x128xf32> to vector<2x128xf32>
    %13 = arith.addf %10, %12 : vector<2x128xf32>
    %14 = math.sin %13 : vector<2x128xf32>
    %c0_3 = arith.constant 0 : index
    %c0_4 = arith.constant 0 : index
    %15 = vector.load %arg3[%c0_3, %c0_4] : memref<2x128xf32, #tpu.memory_space<vmem>>, vector<2x128xf32>
    tpu.vector_store %arg3[%c0_3, %c0_4], %14 {strides = array<i32>} : memref<2x128xf32, #tpu.memory_space<vmem>>, vector<2x128xf32>,
    return
  }
  func.func @transform_0(%arg0: i32) -> (i32, i32) {
    %c0_i32 = arith.constant 0 : i32
    %c0_i32_0 = arith.constant 0 : i32
    %c0_i32_1 = arith.constant 0 : i32
    return %c0_i32, %c0_i32_0 : i32, i32
  }
  func.func @transform_1(%arg0: i32) -> (i32, i32) {
    %c0_i32 = arith.constant 0 : i32
    %c0_i32_0 = arith.constant 0 : i32
    %c0_i32_1 = arith.constant 0 : i32
    return %c0_i32, %c0_i32_0 : i32, i32
  }
  func.func @transform_2(%arg0: i32) -> (i32, i32) {
    %c0_i32 = arith.constant 0 : i32
    %c0_i32_0 = arith.constant 0 : i32
    return %arg0, %c0_i32 : i32, i32
  }
}

</mosaic_0001>

<bundles_post_ra>
// kernel: tpu_custom_call.1
= control target key start
LH: loop header
LB: loop body
LE: loop exit
PB: predicated region body
PF: predicated region fallthrough
CT: control target
= control target key end

     0   :  { %7 = vsyncpa [#allocation3], 0  ;;  %s308_s0 = inlined_call_operand.hbm [shape: f32[1,128], index: 0, kind: input, shape index: {}]   ;;  %s309_s1 = inlined_call_operand.vmem [shape: f32[1,128], index: 1, kind: input, shape index: {}]   ;;  %s310_s2 = inlined_call_operand.hbm [shape: f32[2,128], index: 2, kind: output, shape index: {}]  }
   0x1   :  { %8 = vsyncpa [#allocation4], 0  ;;  %s237_s9 = smov [#allocation2]   ;;  %s189_s13 = scalar_lea.hbm %s308_s0, 16 }
   0x2   :  { %s15_s10 = sshll.u32 %s237_s9, 4  ;;  %p190_p0 = scmp.ne.s32.totalorder %s308_s0, %s189_s13  ;;  %s16_s10 = int_to_ptr.vmem [resolvable:$true] %s15_s10 }
   0x3   :  { %p193_p1 = scmp.lt.u32.totalorder %s189_s13, %s308_s0 }
   0x5   :  { %p195_p2 = pnand %p193_p1, %p190_p0 }
   0x7   :  { %198 = shalt.err (!%p195_p2)
}
   0x8   :  { %s199_s18 = scalar_lea.vmem %s16_s10, 16  ;;  %s203_s19 = scalar_lea.vmem %s16_s10, 32 }
   0x9   :  { %p200_p3 = scmp.ne.s32.totalorder %s16_s10, %s199_s18  ;;  %p204_p4 = scmp.lt.s32.totalorder %s16_s10, %s16_s10 }
   0xa   :  { %p205_p5 = scmp.lt.s32.totalorder %s203_s19, %s199_s18 }
   0xc   :  { %p206_p6 = por %p205_p5, %p204_p4 }
   0xe   :  { %p207_p7 = pnand %p206_p6, %p200_p3 }
  0x10   :  { %210 = shalt.err (!%p207_p7)
}
  0x11   :  { %18 = dma.hbm_to_vmem [thread:$0]  %s308_s0, 16, %s16_s10, [#allocation3]  }
  0x12   :  { %233 = dma.done.wait [#allocation3], 16  }
  0x13   :  { %234 = vsyncadd [#allocation3], 4294967280  ;;  %v25_v0 = vlaneseq  ;;  %v167_v4 = vld [vmem:[#allocation2] ss:$0 sm:$0xff]  ;;  %v238_v19 = vmov 683565275  }
  0x14   :  { %v168_v5 = vld [vmem:[%s309_s1] ss:$0 sm:$0xff]  ;;  %v239_v21 = vmov 2475754826   ;;  %v240_v23 = vmov 2131351028  }
  0x15   :  { %v26_v1 = vshrl.u32 %v25_v0, 7  ;;  %v241_v25 = vmov 2102212464   ;;  %v242_v27 = vmov 920167782   ;;  %s244_s0 = smov [#allocation5]  }
  0x16   :  { %v243_v34 = vmov 1326507024   ;;  %s158_s1 = sshll.u32 %s244_s0, 4  ;;  %s159_s1 = int_to_ptr.vmem [resolvable:$true] %s158_s1 }
  0x17   :  { %v29_v2 = vcvt.s32.f32 %v26_v1  ;;  %s211_s24 = scalar_lea.vmem %s159_s1, 32  ;;  %p216_p9 = scmp.lt.s32.totalorder %s159_s1, %s159_s1 }
  0x18   :  { %p212_p8 = scmp.ne.s32.totalorder %s159_s1, %s211_s24  ;;  %p217_p10 = scmp.lt.s32.totalorder %s211_s24, %s211_s24 }
  0x19   :  { %v30_v3 = vmul.f32 4.0, %v29_v2 }
  0x1a   :  { %p218_p11 = por %p217_p10, %p216_p9 }
  0x1b   :  { %v38_v6 = vmul.f32 %v167_v4, %v30_v3 }
  0x1c   :  { %p219_p12 = pnand %p218_p11, %p212_p8 }
  0x1d   :  { %v275_v7 = vadd.f32 %v168_v5, %v38_v6 }
  0x1f   :  { %v50_v8 = vand.u32 2139095040, %v275_v7  ;;  %v47_v10 = vand.u32 2147483647, %v275_v7  ;;  %vm49_vm7 = vcmp.lt.s32.totalorder %v275_v7, 0  ;;  %vm139_vm12 = vweird.f32 %v275_v7 }
  0x21   :  { %v51_v9 = vshrl.u32 %v50_v8, 23  ;;  %v54_v13 = vand.u32 8388607, %v47_v10  ;;  %vm48_vm8 = vcmp.le.f32.partialorder %v47_v10, 0.7853982 }
  0x23   :  { %v169_v11 = vadd.s32 4294967169, %v51_v9  ;;  %v55_v16 = vor.u32 8388608, %v54_v13 }
  0x25   :  { %v57_v12 = vadd.s32 1, %v169_v11  ;;  %v95_v36 = vshll.u32 %v55_v16, 8 }
  0x27   :  { %vm58_vm0 = vcmp.gt.s32.totalorder %v57_v12, 0 }
  0x28   :  { %v59_v14 = vsel %vm58_vm0, %v57_v12, 0 }
  0x29   :  { %v61_v15 = vand.u32 31, %v59_v14  ;;  %v60_v17 = vshrl.u32 %v59_v14, 5 }
  0x2b   :  { %v62_v18 = vsub.s32 32, %v61_v15  ;;  %v64_v20 = vshll.u32 %v238_v19, %v61_v15  ;;  %v67_v22 = vshll.u32 %v239_v21, %v61_v15  ;;  %v70_v24 = vshll.u32 %v240_v23, %v61_v15 }
  0x2c   :  { %v73_v26 = vshll.u32 %v241_v25, %v61_v15  ;;  %v76_v28 = vshll.u32 %v242_v27, %v61_v15  ;;  %vm79_vm1 = vcmp.lt.s32.totalorder %v60_v17, 1  ;;  %vm82_vm2 = vcmp.lt.s32.totalorder %v60_v17, 4 }
  0x2d   :  { %v63_v29 = vshrl.u32 %v238_v19, %v62_v18  ;;  %v65_v30 = vshrl.u32 %v239_v21, %v62_v18  ;;  %v68_v31 = vshrl.u32 %v240_v23, %v62_v18  ;;  %v71_v32 = vshrl.u32 %v241_v25, %v62_v18 }
  0x2e   :  { %v74_v33 = vshrl.u32 %v242_v27, %v62_v18  ;;  %v77_v35 = vshrl.u32 %v243_v34, %v62_v18  ;;  %vm80_vm3 = vcmp.lt.s32.totalorder %v60_v17, 2  ;;  %vm81_vm4 = vcmp.lt.s32.totalorder %v60_v17, 3 }
  0x2f   :  { %v66_v37 = vor.u32 %v65_v30, %v64_v20  ;;  %v69_v38 = vor.u32 %v68_v31, %v67_v22  ;;  %v72_v39 = vor.u32 %v71_v32, %v70_v24 }
  0x30   :  { %v75_v40 = vor.u32 %v74_v33, %v73_v26  ;;  %v78_v41 = vor.u32 %v77_v35, %v76_v28 }
  0x31   :  { %v83_v42 = vsel %vm79_vm1, %v63_v29, %v66_v37  ;;  %v84_v43 = vsel %vm82_vm2, %v72_v39, 2102212464  ;;  %v87_v44 = vsel %vm79_vm1, %v66_v37, %v69_v38  ;;  %v91_v45 = vsel %vm79_vm1, %v69_v38, %v72_v39 }
  0x32   :  { %v85_v46 = vsel %vm81_vm4, %v69_v38, %v84_v43  ;;  %v88_v47 = vsel %vm82_vm2, %v75_v40, 920167782  ;;  %v92_v48 = vsel %vm82_vm2, %v78_v41, 1326507024 }
  0x33   :  { %v89_v49 = vsel %vm81_vm4, %v72_v39, %v88_v47  ;;  %v93_v50 = vsel %vm81_vm4, %v75_v40, %v92_v48  ;;  %v86_v51 = vsel %vm80_vm3, %v83_v42, %v85_v46 }
  0x34   :  { %v90_v52 = vsel %vm80_vm3, %v87_v44, %v89_v49  ;;  %v94_v53 = vsel %vm80_vm3, %v91_v45, %v93_v50  ;;  %v102_v58 = vmul.u32 %v95_v36, %v86_v51 }
  0x35   :  { %v281_v54 = vmul.u32.u64.low %v95_v36, %v94_v53  ;;  %v282_v55 = vmul.u32.u64.high %v95_v36, %v94_v53, %v281_v54  ;;  %v284_v56 = vmul.u32.u64.low %v95_v36, %v90_v52  ;;  %v285_v57 = vmul.u32.u64.high %v95_v36, %v90_v52, %v284_v56 }
  0x37   :  { %vm104_vm5 = vc.u32 %v282_v55, %v284_v56  ;;  %v105_v59 = vadd.s32 1, %v285_v57  ;;  %v103_v6 = vadd.s32 %v284_v56, %v282_v55 }
  0x39   :  { %v106_v60 = vsel %vm104_vm5, %v105_v59, %v285_v57 }
  0x3a   :  { %v107_v61 = vadd.s32 %v106_v60, %v102_v58 }
  0x3c   :  { %v108_v62 = vadd.s32 536870912, %v107_v61 }
  0x3e   :  { %v109_v63 = vshrl.u32 %v108_v62, 30 }
  0x40   :  { %v110_v0 = vshll.u32 %v109_v63, 30  ;;  %v133_v20 = vsub.s32 4, %v109_v63 }
  0x42   :  { %v111_v1 = vsub.s32 %v107_v61, %v110_v0  ;;  %v134_v23 = vsel %vm49_vm7, %v133_v20, %v109_v63 }
  0x43   :  { %v136_v26 = vsel %vm48_vm8, 0, %v134_v23 }
  0x44   :  { %v113_v2 = vsub.s32 0, %v111_v1  ;;  %v140_v27 = vadd.s32 3, %v136_v26 }
  0x46   :  { %v170_v3 = vmin.u32 %v113_v2, %v111_v1  ;;  %v141_v28 = vand.u32 3, %v140_v27 }
  0x48   :  { %v115_v4 = vclz %v170_v3  ;;  %vm146_vm9 = vcmp.eq.s32.totalorder %v141_v28, 2  ;;  %vm143_vm10 = vcmp.eq.s32.totalorder %v141_v28, 0  ;;  %vm142_vm11 = vcmp.lt.s32.totalorder %v141_v28, 2 }
  0x4a   :  { %v171_v5 = vadd.s32 4294967294, %v115_v4 }
  0x4c   :  { %vm172_vm6 = vcmp.lt.s32.totalorder %v171_v5, 0 }
  0x4d   :  { %v118_v8 = vsel %vm172_vm6, 0, %v171_v5 }
  0x4e   :  { %v119_v9 = vsub.s32 32, %v118_v8  ;;  %v120_v11 = vshll.u32 %v111_v1, %v118_v8  ;;  %v123_v12 = vsub.s32 4294967266, %v118_v8 }
  0x50   :  { %v121_v13 = vshrl.u32 %v103_v6, %v119_v9  ;;  %v124_v14 = vadd.s32 127, %v123_v12 }
  0x52   :  { %v122_v15 = vor.u32 %v121_v13, %v120_v11  ;;  %v125_v16 = vshll.u32 %v124_v14, 23 }
  0x54   :  { %v126_v17 = vor.u32 4788187, %v125_v16  ;;  %v129_v18 = vcvt.s32.f32 %v122_v15 }
  0x56   :  { %v127_v19 = vand.u32 2147483647, %v126_v17 }
  0x58   :  { %v130_v21 = vmul.f32 %v129_v18, %v127_v19 }
  0x5a   :  { %v131_v22 = vxor.u32 2147483648, %v130_v21 }
  0x5c   :  { %v132_v24 = vsel %vm49_vm7, %v131_v22, %v130_v21 }
  0x5d   :  { %v135_v25 = vsel %vm48_vm8, %v275_v7, %v132_v24 }
  0x5e   :  { %185 = vcosq.f32 %v135_v25 }
  0x5f   :  { %187 = vsinq.f32 %v135_v25 }
  0x68   :  { %v186_v29 = vpop.eup %185 }
  0x69   :  { %v188_v30 = vpop.eup %187  ;;  %v147_v31 = vxor.u32 2147483648, %v186_v29 }
  0x6a   :  { %v144_v32 = vxor.u32 2147483648, %v188_v30 }
  0x6b   :  { %v148_v10 = vsel %vm146_vm9, %v147_v31, %v188_v30 }
  0x6c   :  { %v145_v33 = vsel %vm143_vm10, %v186_v29, %v144_v32 }
  0x6d   :  { %v149_v34 = vsel %vm142_vm11, %v145_v33, %v148_v10 }
  0x6e   :  { %v150_v35 = vsel %vm139_vm12, nan, %v149_v34 }
  0x6f   :  { %151 = vst [vmem:[#allocation5] sm:$0x3] %v150_v35 }
  0x70   :  { %222 = shalt.err (!%p219_p12)
}
  0x71   :  { %s223_s27 = scalar_lea.hbm %s310_s2, 32 }
  0x72   :  { %p224_p13 = scmp.ne.s32.totalorder %s310_s2, %s223_s27  ;;  %p227_p0 = scmp.lt.u32.totalorder %s223_s27, %s310_s2 }
  0x74   :  { %p229_p1 = pnand %p227_p0, %p224_p13 }
  0x76   :  { %232 = shalt.err (!%p229_p1)
}
  0x77   :  { %161 = dma.vmem_to_hbm [thread:$0]  %s159_s1, 32, %s310_s2, [#allocation4]  }
  0x78   :  { %235 = dma.done.wait [#allocation4], 32  }
  0x79   :  { %236 = vsyncadd [#allocation4], 4294967264 }
  0x7a   :  { %165 = vsyncpa [#allocation3], 1 }
  0x7b   :  { %166 = vsyncpa [#allocation4], 1 }

</bundles_post_ra>
